<compile_context>
chip_gen: v7x
topology: tpu7x:2x2x1
jax: 0.10.0
libtpu: 0.0.40
codegen_flags: <defaults>
</compile_context>

<pallas_src>
from functools import partial

import jax
import jax.numpy as jnp
from jax.experimental import pallas as pl
from jax.experimental.pallas import tpu as pltpu


def fcn_kernel(xt_ref, w0_ref, b0_ref, wh_ref, bh_ref, we_ref, be_ref, ot_ref,
               *, n_hidden_layers, use_bf16=False):
    """Fused MLP forward for one batch tile, feature-major (batch on lanes).

    xt_ref : (N_IN, TB)        w0_ref: (H, N_IN)     b0_ref: (H, 1)
    wh_ref : (L-1, H, H)       bh_ref: (L-1, H, 1)
    we_ref : (N_OUT, H)        be_ref: (N_OUT, 1)
    ot_ref : (N_OUT, TB)   -- lane-dense output block, no transpose needed.
    """
    n_in = xt_ref.shape[0]
    cdt = jnp.bfloat16 if use_bf16 else jnp.float32

    # ---- input layer + tanh ------------------------------------------------
    if n_in <= 8:
        # Tiny contraction dim: accumulate outer products on the VPU instead
        # of paying an MXU fill/drain for 2 useful MACs per column.
        xt = xt_ref[...]                     # (N_IN, TB)
        w0 = w0_ref[...]                     # (H, N_IN)
        pre = b0_ref[...]                    # (H, 1) -> broadcasts to (H, TB)
        for k in range(n_in):                # static unroll
            # (H,1) * (1,TB): x row is a cheap sublane broadcast.
            pre = pre + w0[:, k:k + 1] * xt[k:k + 1, :]
        h = jnp.tanh(pre)                    # (H, TB), lane-dense
    else:
        h = jnp.tanh(
            jnp.dot(w0_ref[...], xt_ref[...],
                    preferred_element_type=jnp.float32) + b0_ref[...])

    h = h.astype(cdt)

    # ---- hidden layers + tanh (static unrolled; layer count is compile-time)
    for l in range(n_hidden_layers):
        pre = (jnp.dot(wh_ref[l].astype(cdt), h,
                       preferred_element_type=jnp.float32)
               + bh_ref[l])                  # bh_ref[l] is (H, 1)
        h = jnp.tanh(pre.astype(cdt))        # (H, TB)

    # ---- output layer (no activation): (N_OUT,H) @ (H,TB) -> (N_OUT,TB) ---
    out = (jnp.dot(we_ref[...].astype(h.dtype), h,
                   preferred_element_type=jnp.float32)
           + be_ref[...])                    # (N_OUT, TB), lane-dense
    ot_ref[...] = out.astype(ot_ref.dtype)


def _auto_tile_batch(B):
    """Pick the batch tile (lane axis of every block).

    With the feature-major layout, h occupies only H*TB/1024 vregs (TB=512,
    H=32 -> 16 dense vregs), so vreg pressure allows big tiles and VMEM is
    never the constraint.  Prefer >= 2 grid steps once the batch is large
    enough so v7x's two TensorCores both get work; tiles stay multiples of
    128 to keep (8,128)-aligned, lane-dense stores.
    """
    if B <= 128:
        return B
    for t in (512, 256, 128):
        if B % t == 0 and (B // t) >= 2:
            return t
    return B


def fcn_forward(x, params, *, n_layers, tile_batch=None, use_bf16=False):
    """x: (B, N_IN) -> (B, N_OUT).  Weights are PyTorch-native (out, in)."""
    w0, b0, wh, bh, we, be = params
    B, n_in = x.shape
    H = w0.shape[0]
    n_out = we.shape[0]
    n_hidden_layers = n_layers - 1
    assert n_hidden_layers >= 1, "expects at least one hidden Linear block"

    if tile_batch is None:
        tile_batch = _auto_tile_batch(B)
    assert B % tile_batch == 0, "batch must be divisible by the batch tile"
    # Lane-dense blocks require tile_batch == B or a multiple of 128.
    assert tile_batch == B or tile_batch % 128 == 0

    # Feature-major input: batch on the lane axis (free-ish relayout in XLA
    # for N_IN = 2).
    xt = x.T                                       # (N_IN, B)

    kernel = partial(fcn_kernel, n_hidden_layers=n_hidden_layers,
                     use_bf16=use_bf16)
    grid = (B // tile_batch,)

    flops = 2 * B * (n_in * H + n_hidden_layers * H * H + H * n_out)
    transcendentals = B * H * n_layers
    weight_elems = (n_in * H + H
                    + n_hidden_layers * (H * H + H)
                    + H * n_out + n_out)
    bytes_accessed = 4 * (B * (n_in + n_out) + weight_elems)

    out_t = pl.pallas_call(
        kernel,
        # Output is produced feature-major: (N_OUT, B); per-tile stores are
        # lane-dense (width tile_batch), no transpose inside the kernel.
        out_shape=jax.ShapeDtypeStruct((n_out, B), x.dtype),
        grid_spec=pltpu.PrefetchScalarGridSpec(
            num_scalar_prefetch=0,
            grid=grid,
            in_specs=[
                # batch-tiled activations (N_IN, TB)
                pl.BlockSpec((n_in, tile_batch), lambda i: (0, i)),
                # full (tiny, ~9 KB total) weights, resident every step
                pl.BlockSpec((H, n_in), lambda i: (0, 0)),
                pl.BlockSpec((H, 1), lambda i: (0, 0)),
                pl.BlockSpec((n_hidden_layers, H, H), lambda i: (0, 0, 0)),
                pl.BlockSpec((n_hidden_layers, H, 1), lambda i: (0, 0, 0)),
                pl.BlockSpec((n_out, H), lambda i: (0, 0)),
                pl.BlockSpec((n_out, 1), lambda i: (0, 0)),
            ],
            out_specs=pl.BlockSpec((n_out, tile_batch), lambda i: (0, i)),
        ),
        compiler_params=pltpu.CompilerParams(
            dimension_semantics=("parallel",)),
        cost_estimate=pl.CostEstimate(
            flops=flops,
            transcendentals=transcendentals,
            bytes_accessed=bytes_accessed),
    )(xt, w0, b0, wh, bh, we, be)

    # (N_OUT, B) -> (B, N_OUT); a free reshape when N_OUT == 1.
    return out_t.T


def init_fcn_params(key, n_input, n_output, n_hidden, n_layers,
                    dtype=jnp.float32):
    """Deterministic PyTorch-style Linear init: U(-1/sqrt(fan_in), +1/sqrt(fan_in)).
    Weights are PyTorch-native (out_features, in_features); biases are stored
    as column vectors (out_features, 1) for clean feature-major broadcasting."""
    keys = jax.random.split(key, 6)

    def uniform(k, shape, fan_in):
        bound = 1.0 / (fan_in ** 0.5)
        return jax.random.uniform(k, shape, dtype, -bound, bound)

    n_hid_layers = n_layers - 1
    w0 = uniform(keys[0], (n_hidden, n_input), n_input)
    b0 = uniform(keys[1], (n_hidden, 1), n_input)
    wh = uniform(keys[2], (n_hid_layers, n_hidden, n_hidden), n_hidden)
    bh = uniform(keys[3], (n_hid_layers, n_hidden, 1), n_hidden)
    we = uniform(keys[4], (n_output, n_hidden), n_hidden)
    be = uniform(keys[5], (n_output, 1), n_hidden)
    return (w0, b0, wh, bh, we, be)


def fcn_reference(x, params, n_layers):
    """Pure-JAX reference of the PyTorch forward (weights are (out, in))."""
    w0, b0, wh, bh, we, be = params
    h = jnp.tanh(x @ w0.T + b0[:, 0])
    for l in range(n_layers - 1):
        h = jnp.tanh(h @ wh[l].T + bh[l, :, 0])
    return h @ we.T + be[:, 0]


if __name__ == "__main__":
    # Small shapes consistent with a PINN FCN: 2 inputs (e.g. (x, t)), 1 output.
    BATCH, N_INPUT, N_OUTPUT, N_HIDDEN, N_LAYERS = 64, 2, 1, 32, 3
    # NOTE: the `inversion=True` alpha parameter of the PyTorch module does not
    # participate in forward(), so it is intentionally omitted here.

    key = jax.random.PRNGKey(0)
    k_param, k_x = jax.random.split(key)
    params = init_fcn_params(k_param, N_INPUT, N_OUTPUT, N_HIDDEN, N_LAYERS)
    x = jax.random.normal(k_x, (BATCH, N_INPUT), dtype=jnp.float32)

    out = fcn_forward(x, params, n_layers=N_LAYERS)  # auto tile: TB=B, grid=(1,)
    out = jax.block_until_ready(out)

    ref = fcn_reference(x, params, N_LAYERS)
    assert out.shape == (BATCH, N_OUTPUT)
    assert jnp.allclose(out, ref, atol=1e-5, rtol=1e-5), "mismatch vs JAX reference"

    print("KERNEL_OK")
</pallas_src>

<mosaic_0001>
module attributes {stable_mosaic.version = 11 : i64} {
  func.func @fcn_kernel(%arg0: i32, %arg1: memref<2x64xf32, #tpu.memory_space<vmem>>, %arg2: memref<32x2xf32, #tpu.memory_space<vmem>>, %arg3: memref<32x1xf32, #tpu.memory_space<vmem>>, %arg4: memref<2x32x32xf32, #tpu.memory_space<vmem>>, %arg5: memref<2x32x1xf32, #tpu.memory_space<vmem>>, %arg6: memref<1x32xf32, #tpu.memory_space<vmem>>, %arg7: memref<1x1xf32, #tpu.memory_space<vmem>>, %arg8: memref<1x64xf32, #tpu.memory_space<vmem>>) attributes {dimension_semantics = [#tpu.dimension_semantics<parallel>], iteration_bounds = array<i64: 1>, scalar_prefetch = 0 : i64, scratch_operands = 0 : i64, tpu.core_type = #tpu.core_type<tc>, window_params = [{transform_indices = @transform_0, window_bounds = array<i64: 2, 64>}, {pipeline_mode = #tpu.pipeline_mode<synchronous>, transform_indices = @transform_1, window_bounds = array<i64: 32, 2>}, {pipeline_mode = #tpu.pipeline_mode<synchronous>, transform_indices = @transform_2, window_bounds = array<i64: 32, 1>}, {pipeline_mode = #tpu.pipeline_mode<synchronous>, transform_indices = @transform_3, window_bounds = array<i64: 2, 32, 32>}, {pipeline_mode = #tpu.pipeline_mode<synchronous>, transform_indices = @transform_4, window_bounds = array<i64: 2, 32, 1>}, {pipeline_mode = #tpu.pipeline_mode<synchronous>, transform_indices = @transform_5, window_bounds = array<i64: 1, 32>}, {pipeline_mode = #tpu.pipeline_mode<synchronous>, transform_indices = @transform_6, window_bounds = array<i64: 1, 1>}, {transform_indices = @transform_7, window_bounds = array<i64: 1, 64>}]} {
    %c0 = arith.constant 0 : index
    %c0_0 = arith.constant 0 : index
    %0 = vector.load %arg1[%c0, %c0_0] : memref<2x64xf32, #tpu.memory_space<vmem>>, vector<2x64xf32>
    %c0_1 = arith.constant 0 : index
    %c0_2 = arith.constant 0 : index
    %1 = vector.load %arg2[%c0_1, %c0_2] : memref<32x2xf32, #tpu.memory_space<vmem>>, vector<32x2xf32>
    %c0_3 = arith.constant 0 : index
    %c0_4 = arith.constant 0 : index
    %2 = vector.load %arg3[%c0_3, %c0_4] : memref<32x1xf32, #tpu.memory_space<vmem>>, vector<32x1xf32>
    %3 = vector.extract_strided_slice %1 {offsets = [0, 0], sizes = [32, 1], strides = [1, 1]} : vector<32x2xf32> to vector<32x1xf32>
    %4 = vector.extract_strided_slice %0 {offsets = [0, 0], sizes = [1, 64], strides = [1, 1]} : vector<2x64xf32> to vector<1x64xf32>
    %5 = vector.broadcast %3 : vector<32x1xf32> to vector<32x64xf32>
    %6 = vector.broadcast %4 : vector<1x64xf32> to vector<32x64xf32>
    %7 = arith.mulf %5, %6 : vector<32x64xf32>
    %8 = vector.broadcast %2 : vector<32x1xf32> to vector<32x64xf32>
    %9 = arith.addf %8, %7 : vector<32x64xf32>
    %10 = vector.extract_strided_slice %1 {offsets = [0, 1], sizes = [32, 1], strides = [1, 1]} : vector<32x2xf32> to vector<32x1xf32>
    %11 = vector.extract_strided_slice %0 {offsets = [1, 0], sizes = [1, 64], strides = [1, 1]} : vector<2x64xf32> to vector<1x64xf32>
    %12 = vector.broadcast %10 : vector<32x1xf32> to vector<32x64xf32>
    %13 = vector.broadcast %11 : vector<1x64xf32> to vector<32x64xf32>
    %14 = arith.mulf %12, %13 : vector<32x64xf32>
    %15 = arith.addf %9, %14 : vector<32x64xf32>
    %16 = math.tanh %15 : vector<32x64xf32>
    %c0_5 = arith.constant 0 : index
    %c0_6 = arith.constant 0 : index
    %c0_7 = arith.constant 0 : index
    %17 = vector.load %arg4[%c0_5, %c0_6, %c0_7] : memref<2x32x32xf32, #tpu.memory_space<vmem>>, vector<1x32x32xf32>
    %18 = vector.shape_cast %17 : vector<1x32x32xf32> to vector<32x32xf32>
    %cst = arith.constant dense<0.000000e+00> : vector<32x64xf32>
    %19 = tpu.matmul %18, %16, %cst {dimension_numbers = #tpu.dot_dimension_numbers<[1], [0], [0], [1], [0, 0, 1, 1], [], []>} : vector<32x32xf32>, vector<32x64xf32>, vector<32x64xf32> -> vector<32x64xf32>
    %c0_8 = arith.constant 0 : index
    %c0_9 = arith.constant 0 : index
    %c0_10 = arith.constant 0 : index
    %20 = vector.load %arg5[%c0_8, %c0_9, %c0_10] : memref<2x32x1xf32, #tpu.memory_space<vmem>>, vector<1x32x1xf32>
    %21 = vector.shape_cast %20 : vector<1x32x1xf32> to vector<32x1xf32>
    %22 = vector.broadcast %21 : vector<32x1xf32> to vector<32x64xf32>
    %23 = arith.addf %19, %22 : vector<32x64xf32>
    %24 = math.tanh %23 : vector<32x64xf32>
    %c1 = arith.constant 1 : index
    %c0_11 = arith.constant 0 : index
    %c0_12 = arith.constant 0 : index
    %25 = vector.load %arg4[%c1, %c0_11, %c0_12] : memref<2x32x32xf32, #tpu.memory_space<vmem>>, vector<1x32x32xf32>
    %26 = vector.shape_cast %25 : vector<1x32x32xf32> to vector<32x32xf32>
    %cst_13 = arith.constant dense<0.000000e+00> : vector<32x64xf32>
    %27 = tpu.matmul %26, %24, %cst_13 {dimension_numbers = #tpu.dot_dimension_numbers<[1], [0], [0], [1], [0, 0, 1, 1], [], []>} : vector<32x32xf32>, vector<32x64xf32>, vector<32x64xf32> -> vector<32x64xf32>
    %c1_14 = arith.constant 1 : index
    %c0_15 = arith.constant 0 : index
    %c0_16 = arith.constant 0 : index
    %28 = vector.load %arg5[%c1_14, %c0_15, %c0_16] : memref<2x32x1xf32, #tpu.memory_space<vmem>>, vector<1x32x1xf32>
    %29 = vector.shape_cast %28 : vector<1x32x1xf32> to vector<32x1xf32>
    %30 = vector.broadcast %29 : vector<32x1xf32> to vector<32x64xf32>
    %31 = arith.addf %27, %30 : vector<32x64xf32>
    %32 = math.tanh %31 : vector<32x64xf32>
    %c0_17 = arith.constant 0 : index
    %c0_18 = arith.constant 0 : index
    %33 = vector.load %arg6[%c0_17, %c0_18] : memref<1x32xf32, #tpu.memory_space<vmem>>, vector<1x32xf32>
    %cst_19 = arith.constant dense<0.000000e+00> : vector<1x64xf32>
    %34 = tpu.matmul %33, %32, %cst_19 {dimension_numbers = #tpu.dot_dimension_numbers<[1], [0], [0], [1], [0, 0, 1, 1], [], []>} : vector<1x32xf32>, vector<32x64xf32>, vector<1x64xf32> -> vector<1x64xf32>
    %c0_20 = arith.constant 0 : index
    %c0_21 = arith.constant 0 : index
    %35 = vector.load %arg7[%c0_20, %c0_21] : memref<1x1xf32, #tpu.memory_space<vmem>>, vector<1x1xf32>
    %36 = vector.broadcast %35 : vector<1x1xf32> to vector<1x64xf32>
    %37 = arith.addf %34, %36 : vector<1x64xf32>
    %c0_22 = arith.constant 0 : index
    %c0_23 = arith.constant 0 : index
    %38 = vector.load %arg8[%c0_22, %c0_23] : memref<1x64xf32, #tpu.memory_space<vmem>>, vector<1x64xf32>
    tpu.vector_store %arg8[%c0_22, %c0_23], %37 {strides = array<i32>} : memref<1x64xf32, #tpu.memory_space<vmem>>, vector<1x64xf32>,
    return
  }
  func.func @transform_0(%arg0: i32) -> (i32, i32) {
    %c0_i32 = arith.constant 0 : i32
    %c0_i32_0 = arith.constant 0 : i32
    return %c0_i32, %arg0 : i32, i32
  }
  func.func @transform_1(%arg0: i32) -> (i32, i32) {
    %c0_i32 = arith.constant 0 : i32
    %c0_i32_0 = arith.constant 0 : i32
    %c0_i32_1 = arith.constant 0 : i32
    return %c0_i32, %c0_i32_0 : i32, i32
  }
  func.func @transform_2(%arg0: i32) -> (i32, i32) {
    %c0_i32 = arith.constant 0 : i32
    %c0_i32_0 = arith.constant 0 : i32
    %c0_i32_1 = arith.constant 0 : i32
    return %c0_i32, %c0_i32_0 : i32, i32
  }
  func.func @transform_3(%arg0: i32) -> (i32, i32, i32) {
    %c0_i32 = arith.constant 0 : i32
    %c0_i32_0 = arith.constant 0 : i32
    %c0_i32_1 = arith.constant 0 : i32
    %c0_i32_2 = arith.constant 0 : i32
    return %c0_i32, %c0_i32_0, %c0_i32_1 : i32, i32, i32
  }
  func.func @transform_4(%arg0: i32) -> (i32, i32, i32) {
    %c0_i32 = arith.constant 0 : i32
    %c0_i32_0 = arith.constant 0 : i32
    %c0_i32_1 = arith.constant 0 : i32
    %c0_i32_2 = arith.constant 0 : i32
    return %c0_i32, %c0_i32_0, %c0_i32_1 : i32, i32, i32
  }
  func.func @transform_5(%arg0: i32) -> (i32, i32) {
    %c0_i32 = arith.constant 0 : i32
    %c0_i32_0 = arith.constant 0 : i32
    %c0_i32_1 = arith.constant 0 : i32
    return %c0_i32, %c0_i32_0 : i32, i32
  }
  func.func @transform_6(%arg0: i32) -> (i32, i32) {
    %c0_i32 = arith.constant 0 : i32
    %c0_i32_0 = arith.constant 0 : i32
    %c0_i32_1 = arith.constant 0 : i32
    return %c0_i32, %c0_i32_0 : i32, i32
  }
  func.func @transform_7(%arg0: i32) -> (i32, i32) {
    %c0_i32 = arith.constant 0 : i32
    %c0_i32_0 = arith.constant 0 : i32
    return %c0_i32, %arg0 : i32, i32
  }
}

</mosaic_0001>

<bundles_post_ra>
// kernel: tpu_custom_call.1
= control target key start
LH: loop header
LB: loop body
LE: loop exit
PB: predicated region body
PF: predicated region fallthrough
CT: control target
= control target key end

     0   :  { %s800_s0 = inlined_call_operand.vmem [shape: f32[2,64], index: 0, kind: input, shape index: {}]   ;;  %s801_s1 = inlined_call_operand.vmem [shape: f32[32,2], index: 1, kind: input, shape index: {}]   ;;  %s802_s2 = inlined_call_operand.vmem [shape: f32[32,1], index: 2, kind: input, shape index: {}]   ;;  %s803_s3 = inlined_call_operand.vmem [shape: f32[2,32,32], index: 3, kind: input, shape index: {}]   ;;  %s804_s4 = inlined_call_operand.vmem [shape: f32[2,32,1], index: 4, kind: input, shape index: {}]   ;;  %s805_s5 = inlined_call_operand.vmem [shape: f32[1,32], index: 5, kind: input, shape index: {}]   ;;  %s806_s6 = inlined_call_operand.<no memory space> [shape: f32[1,1], index: 6, kind: input, shape index: {}]   ;;  %s807_s7 = inlined_call_operand.hbm [shape: f32[1,64], index: 7, kind: output, shape index: {}]  }
   0x1   :  { %v12_v0 = vstv %s806_s6 }
   0x2   :  { %13 = vst [vmem:[#allocation2] sm:$0x1] %v12_v0 }
   0x3   :  { %v34_v1 = vld [vmem:[%s802_s2] sm:$0xff]  ;;  %v644_v3 = vmov 0   ;;  %v35_v4 = vld [vmem:[%s802_s2 + $0x8] sm:$0xff] }
   0x4   :  { %v30_v2 = vld [vmem:[%s801_s1] sm:$0xff]  ;;  %589 = vset.pattern.permute.xlu1 %v644_v3  ;;  %588 = vset.pattern.permute.xlu0 %v644_v3  ;;  %v31_v5 = vld [vmem:[%s801_s1 + $0x8] sm:$0xff] }
   0x5   :  { %68 = vperm.xlu1 %589, %v34_v1   ;;  %40 = vperm.xlu0 %588, %v30_v2  }
   0x6   :  { %14 = vsyncpa [#allocation4], 0  ;;  %v33_v6 = vld [vmem:[%s801_s1 + $0x18] sm:$0xff]  ;;  %v645_v7 = vmov 1   ;;  %v32_v8 = vld [vmem:[%s801_s1 + $0x10] sm:$0xff]  ;;  %vm150_vm0 = vcmask 261120   ;;  %v58_v21 = vlaneseq }
   0x7   :  { %v36_v9 = vld [vmem:[%s802_s2 + $0x10] sm:$0xff]  ;;  %v37_v10 = vld [vmem:[%s802_s2 + $0x18] sm:$0xff]  ;;  %v122_v11 = vld [vmem:[%s803_s3] sm:$0xff]  ;;  %vm647_vm1 = vmmov 0   ;;  %s649_s23 = smov [#allocation3]   ;;  %vm467_vm2 = vcmask 516096  }
   0x8   :  { %529 = vmatprep.mubr.msk.f32.mxu0 %vm150_vm0, %v122_v11  ;;  %v126_v12 = vld [vmem:[%s804_s4] sm:$0xff]  ;;  %v127_v13 = vld [vmem:[%s804_s4 + $0x8] sm:$0xff]  ;;  %v128_v14 = vld [vmem:[%s804_s4 + $0x10] sm:$0xff]  ;;  %v745_v22 = vshrl.u32 %v58_v21, 7  ;;  %s475_s24 = sshll.u32 %s649_s23, 4  ;;  %s476_s24 = int_to_ptr.vmem [resolvable:$true] %s475_s24 }
   0x9   :  { %73 = vperm.xlu1 %589, %v35_v4   ;;  %45 = vperm.xlu0 %588, %v31_v5   ;;  %v491_v15 = vld [vmem:[%s804_s4 + $0x20] sm:$0xff]  ;;  %v129_v16 = vld [vmem:[%s804_s4 + $0x18] sm:$0xff]  ;;  %v493_v17 = vld [vmem:[%s804_s4 + $0x30] sm:$0xff]  ;;  %s620_s25 = scalar_lea.vmem %s476_s24, 16  ;;  %s624_s26 = scalar_lea.vmem %s476_s24, 32 }
   0xa   :  { %v492_v18 = vld [vmem:[%s804_s4 + $0x28] sm:$0xff]  ;;  %v384_v19 = vld [vmem:[#allocation2] sm:$0x1]  ;;  %v494_v20 = vld [vmem:[%s804_s4 + $0x38] sm:$0xff]  ;;  %v60_v25 = vsub.s32 0, %v745_v22  ;;  %v108_v27 = vsub.s32 1, %v745_v22  ;;  %p621_p0 = scmp.ne.s32.totalorder %s476_s24, %s620_s25  ;;  %p625_p1 = scmp.lt.s32.totalorder %s476_s24, %s476_s24 }
   0xb   :  { %v29_v26 = vld [vmem:[%s800_s0] sm:$0x3]  ;;  %v123_v62 = vld [vmem:[%s803_s3 + $0x8] sm:$0xff]  ;;  %v124_v63 = vld [vmem:[%s803_s3 + $0x10] sm:$0xff]  ;;  %p626_p2 = scmp.lt.s32.totalorder %s624_s26, %s620_s25 }
   0xc   :  { %v61_v30 = vrot.slane %v29_v26, %v60_v25  ;;  %v109_v31 = vrot.slane %v29_v26, %v108_v27  ;;  %v125_v0 = vld [vmem:[%s803_s3 + $0x18] sm:$0xff]  ;;  %v487_v1 = vld [vmem:[%s803_s3 + $0x20] sm:$0xff]  ;;  %v489_v21 = vld [vmem:[%s803_s3 + $0x30] sm:$0xff]  ;;  %v648_v26 = vmov 0.0  }
   0xd   :  { %590 = vset.pattern.permute.xlu1 %v645_v7  ;;  %55 = vperm.xlu0 %588, %v33_v6   ;;  %p627_p3 = por %p626_p2, %p625_p1 }
   0xe   :  { %95 = vperm.xlu1 %590, %v31_v5   ;;  %543 = vmatprep.mubr.msk.f32.mxu1 %vm150_vm0, %v487_v1 }
   0xf   :  { %p628_p4 = pnand %p627_p3, %p621_p0 }
  0x11   :  { %592 = vset.pattern.permute.xlu0 %v645_v7 }
  0x12   :  { %591 = vset.pattern.permute.xlu1 %v644_v3  ;;  %91 = vperm.xlu0 %592, %v30_v2  }
  0x13   :  { %50 = vperm.xlu1 %591, %v32_v8  }
  0x16   :  { %99 = vperm.xlu0 %592, %v32_v8  }
  0x17   :  { %78 = vperm.xlu1 %591, %v36_v9  }
  0x1a   :  { %595 = vset.pattern.permute.xlu0 %v644_v3 }
  0x1b   :  { %83 = vperm.xlu1 %591, %v37_v10   ;;  %137 = vperm.xlu0 %595, %v127_v13  }
  0x1f   :  { %593 = vset.pattern.permute.xlu1 %v645_v7  ;;  %264 = vperm.xlu0 %595, %v491_v15  }
  0x20   :  { %103 = vperm.xlu1 %593, %v33_v6  }
  0x23   :  { %274 = vperm.xlu0 %595, %v493_v17  }
  0x24   :  { %594 = vset.pattern.permute.xlu1 %v644_v3 }
  0x25   :  { %132 = vperm.xlu1 %594, %v126_v12  }
  0x27   :  { %387 = vperm.xlu0 %595, %v384_v19  }
  0x29   :  { %142 = vperm.xlu1 %594, %v128_v14  }
  0x2d   :  { %147 = vperm.xlu1 %594, %v129_v16  }
  0x31   :  { %269 = vperm.xlu1 %594, %v492_v18  }
  0x35   :  { %279 = vperm.xlu1 %594, %v494_v20   ;;  %v488_v20 = vld [vmem:[%s803_s3 + $0x28] sm:$0xff] }
  0x84   :  { %v69_v23 = vpop.permute.xlu1 %68  ;;  %v41_v24 = vpop.permute.xlu0 %40 }
  0x85   :  { %v62_v35 = vmul.f32 %v61_v30, %v41_v24  ;;  %v646_v24 = vmov 0.0|0.0  }
  0x87   :  { %v86_v40 = vadd.f32 %v69_v23, %v62_v35  ;;  %v490_v23 = vld [vmem:[%s803_s3 + $0x38] sm:$0xff] }
  0x88   :  { %v74_v28 = vpop.permute.xlu1 %73  ;;  %v46_v29 = vpop.permute.xlu0 %45 }
  0x89   :  { %v63_v32 = vmul.f32 %v61_v30, %v46_v29 }
  0x8b   :  { %v87_v37 = vadd.f32 %v74_v28, %v63_v32 }
  0x8c   :  { %v56_v33 = vpop.permute.xlu0 %55 }
  0x8d   :  { %v96_v34 = vpop.permute.xlu1 %95  ;;  %v65_v50 = vmul.f32 %v61_v30, %v56_v33 }
  0x8e   :  { %v111_v36 = vmul.f32 %v109_v31, %v96_v34 }
  0x90   :  { %v115_v38 = vadd.f32 %v111_v36, %v87_v37 }
  0x91   :  { %v92_v39 = vpop.permute.xlu0 %91 }
  0x92   :  { %v110_v41 = vmul.f32 %v109_v31, %v92_v39  ;;  %v51_v42 = vpop.permute.xlu1 %50  ;;  %596 = vtanh.f32 %v115_v38 }
  0x93   :  { %v64_v46 = vmul.f32 %v61_v30, %v51_v42 }
  0x94   :  { %v114_v43 = vadd.f32 %v110_v41, %v86_v40 }
  0x95   :  { %v100_v45 = vpop.permute.xlu0 %99 }
  0x96   :  { %598 = vtanh.f32 %v114_v43  ;;  %v79_v44 = vpop.permute.xlu1 %78  ;;  %v112_v49 = vmul.f32 %v109_v31, %v100_v45  ;;  %v383_v45 = vld [vmem:[%s805_s5] sm:$0x1] }
  0x97   :  { %v88_v48 = vadd.f32 %v79_v44, %v64_v46 }
  0x99   :  { %v116_v52 = vadd.f32 %v112_v49, %v88_v48 }
  0x9a   :  { %v84_v47 = vpop.permute.xlu1 %83  ;;  %v138_v4 = vpop.permute.xlu0 %137 }
  0x9b   :  { %v89_v55 = vadd.f32 %v84_v47, %v65_v50  ;;  %600 = vtanh.f32 %v116_v52 }
  0x9c   :  { %v597_v51 = vpop.eup %596 }
  0x9e   :  { %v265_v28 = vpop.permute.xlu0 %264 }
  0x9f   :  { %v104_v53 = vpop.permute.xlu1 %103 }
  0xa0   :  { %v599_v54 = vpop.eup %598  ;;  %v113_v56 = vmul.f32 %v109_v31, %v104_v53 }
  0xa1   :  { %v560_v57 = vpack.c.bf16 %v597_v51, %v599_v54 }
  0xa2   :  { %v117_v58 = vadd.f32 %v113_v56, %v89_v55  ;;  %v275_v35 = vpop.permute.xlu0 %274 }
  0xa3   :  { %561 = vmatprep.subr.bf16.mxu0 %v560_v57 }
  0xa4   :  { %602 = vtanh.f32 %v117_v58  ;;  %563 = vmatpush3.bf16.msra.mxu0 %v560_v57  ;;  %v133_v2 = vpop.permute.xlu1 %132 }
  0xa5   :  { %v601_v59 = vpop.eup %600 }
  0xa6   :  { %v388_v46 = vpop.permute.xlu0 %387 }
  0xa7   :  { %v393_v47 = vrot.slane %v388_v46, %v60_v25 }
  0xa8   :  { %v143_v3 = vpop.permute.xlu1 %142 }
  0xac   :  { %v148_v9 = vpop.permute.xlu1 %147 }
  0xae   :  { %v603_v60 = vpop.eup %602 }
  0xaf   :  { %v564_v61 = vpack.c.bf16 %v603_v60, %v601_v59 }
  0xb0   :  { %v270_v27 = vpop.permute.xlu1 %269 }
  0xb1   :  { %565 = vmatprep.subr.bf16.mxu0 %v564_v61 }
  0xb2   :  { %567 = vmatpush3.bf16.msra.mxu0 %v564_v61 }
  0xb3   :  { %576 = vmatprep.subr.bf16.mxu0 %v646_v24 }
  0xb4   :  { %v280_v33 = vpop.permute.xlu1 %279 }
  0xb5   :  { %530 = vmatmul.mubr.msk.f32.vlgmr.msra.gmra.mrb[0].mxu0 %vm150_vm0, %v123_v62 }
  0xb6   :  { %532 = vmatprep.mubr.msk.f32.mxu0 %vm150_vm0, %v124_v63 }
  0xb9   :  { %533 = vmatmul.mubr.msk.f32.gmra.mrb[2].mxu0 %vm150_vm0, %v125_v0 }
  0xba   :  { %557 = vmatprep.mubr.msk.f32.mxu0 %vm647_vm1, %v648_v26 }
 0x188   :  { %v531_v5 = vpop.f32.mrb[0].mxu0 }
 0x189   :  { %v235_v6 = vadd.f32 %v531_v5, %v138_v4  ;;  %v229_v7 = vpop.f32.mrb[1].mxu0 }
 0x18a   :  { %v230_v8 = vadd.f32 %v229_v7, %v133_v2 }
 0x18b   :  { %604 = vtanh.f32 %v235_v6 }
 0x18c   :  { %606 = vtanh.f32 %v230_v8  ;;  %v534_v10 = vpop.f32.mrb[2].mxu0 }
 0x18d   :  { %v245_v11 = vadd.f32 %v534_v10, %v148_v9  ;;  %v239_v12 = vpop.f32.mrb[3].mxu0 }
 0x18e   :  { %v240_v13 = vadd.f32 %v239_v12, %v143_v3 }
 0x18f   :  { %608 = vtanh.f32 %v245_v11 }
 0x190   :  { %610 = vtanh.f32 %v240_v13 }
 0x195   :  { %v605_v14 = vpop.eup %604 }
 0x196   :  { %v607_v15 = vpop.eup %606 }
 0x197   :  { %v568_v16 = vpack.c.bf16 %v605_v14, %v607_v15 }
 0x199   :  { %v609_v17 = vpop.eup %608  ;;  %569 = vmatprep.subr.bf16.mxu1 %v568_v16 }
 0x19a   :  { %v611_v18 = vpop.eup %610  ;;  %571 = vmatpush3.bf16.msra.mxu1 %v568_v16 }
 0x19b   :  { %v572_v19 = vpack.c.bf16 %v609_v17, %v611_v18 }
 0x19d   :  { %573 = vmatprep.subr.bf16.mxu1 %v572_v19 }
 0x19e   :  { %575 = vmatpush3.bf16.msra.mxu1 %v572_v19 }
 0x1a1   :  { %544 = vmatmul.mubr.msk.f32.vlgmr.msra.gmra.mrb[0].mxu1 %vm150_vm0, %v488_v20 }
 0x1a2   :  { %546 = vmatprep.mubr.msk.f32.mxu1 %vm150_vm0, %v489_v21 }
 0x1a5   :  { %547 = vmatmul.mubr.msk.f32.gmra.mrb[2].mxu1 %vm150_vm0, %v490_v23 }
 0x274   :  { %v545_v29 = vpop.f32.mrb[0].mxu1 }
 0x275   :  { %v366_v30 = vadd.f32 %v545_v29, %v270_v27  ;;  %v360_v31 = vpop.f32.mrb[1].mxu1 }
 0x276   :  { %v361_v32 = vadd.f32 %v360_v31, %v265_v28 }
 0x277   :  { %612 = vtanh.f32 %v366_v30 }
 0x278   :  { %614 = vtanh.f32 %v361_v32  ;;  %v548_v34 = vpop.f32.mrb[2].mxu1 }
 0x279   :  { %v376_v36 = vadd.f32 %v548_v34, %v280_v33  ;;  %v370_v37 = vpop.f32.mrb[3].mxu1 }
 0x27a   :  { %v371_v38 = vadd.f32 %v370_v37, %v275_v35 }
 0x27b   :  { %616 = vtanh.f32 %v376_v36 }
 0x27c   :  { %618 = vtanh.f32 %v371_v38 }
 0x281   :  { %v613_v39 = vpop.eup %612 }
 0x282   :  { %v615_v40 = vpop.eup %614 }
 0x283   :  { %v577_v41 = vpack.c.bf16 %v613_v39, %v615_v40 }
 0x285   :  { %v617_v42 = vpop.eup %616  ;;  %578 = vmatpush3.bf16.msra.mxu0 %v577_v41 }
 0x286   :  { %v619_v43 = vpop.eup %618  ;;  %579 = vmatprep.subr.bf16.mxu0 %v646_v24 }
 0x287   :  { %v580_v44 = vpack.c.bf16 %v617_v42, %v619_v43 }
 0x289   :  { %581 = vmatpush3.bf16.msra.mxu0 %v580_v44 }
 0x28c   :  { %558 = vmatmul.mubr.msk.f32.vlgmr.msra.gmra.mrb[4].mxu0 %vm150_vm0, %v383_v45 }
 0x35f   :  { %v463_v48 = vpop.f32.mrb[4].mxu0 }
 0x360   :  { %v464_v49 = vadd.f32 %v463_v48, %v393_v47  ;;  %v559_v50 = vpop.f32.mrb[5].mxu0 }
 0x362   :  { %468 = vst.msk [vmem:[#allocation3] sm:$0x1] %vm467_vm2, %v464_v49 }
 0x363   :  { %631 = shalt.err (!%p628_p4)
}
 0x364   :  { %s632_s28 = scalar_lea.hbm %s807_s7, 16 }
 0x365   :  { %p633_p5 = scmp.ne.s32.totalorder %s807_s7, %s632_s28  ;;  %p636_p6 = scmp.lt.u32.totalorder %s632_s28, %s807_s7 }
 0x367   :  { %p638_p7 = pnand %p636_p6, %p633_p5 }
 0x369   :  { %641 = shalt.err (!%p638_p7)
}
 0x36a   :  { %478 = dma.vmem_to_hbm [thread:$0]  %s476_s24, 16, %s807_s7, [#allocation4]  }
 0x36b   :  { %642 = dma.done.wait [#allocation4], 16  }
 0x36c   :  { %643 = vsyncadd [#allocation4], 4294967280 }
 0x36d   :  { %482 = vsyncpa [#allocation4], 1 }

</bundles_post_ra>
